<compile_context>
chip_gen: v6e
topology: v6e:2x2x1
jax: 0.10.0
libtpu: 0.0.40
codegen_flags: <defaults>
</compile_context>

<pallas_src>
import functools

import jax
import jax.numpy as jnp
import numpy as np
from jax import lax
from jax.experimental import pallas as pl
from jax.experimental.pallas import tpu as pltpu


_TILE_BUDGET_BYTES = 8 * 1024 * 1024     # target per-step working set per kernel
_VMEM_LIMIT_BYTES = 48 * 1024 * 1024     # leaves headroom under v7x's 64 MiB physical VMEM


# ----------------------------------------------------------------------------
# Pallas kernels
# ----------------------------------------------------------------------------
def _down_conv_skip_kernel(xc_ref, xt_ref, w1_ref, b1_ref, ws_ref, bs_ref,
                           y_ref, s_ref, *, negative_slope, mm_dtype):
    # xc_ref: (1, 2*TH, Wo, 2*Cin)  x rows [2*i*TH, 2*(i+1)*TH), W-phases packed on lanes
    # xt_ref: (1, 1,   Wo, 2*Cin)   x row 2*i*TH - 1 (clamped; masked for the first tile)
    # w1_ref: (12*Cin, Cout)        stride-2 3x3 conv weight, phase-expanded (zero rows unused)
    # ws_ref: (2*Cin, Cout)         1x1 stride-2 skip conv weight (odd-column half zeroed)
    # y_ref : (1, TH, Wo, Cout)     conv1 + bias + LeakyReLU
    # s_ref : (1, TH, Wo, Cout)     skip conv + bias
    TH, Wo, Cout = y_ref.shape[1], y_ref.shape[2], y_ref.shape[3]
    c2 = xc_ref.shape[3]                                   # 2 * Cin
    i = pl.program_id(1)

    xc = xc_ref[0].astype(jnp.float32)                     # (2*TH, Wo, 2*Cin)
    xc = xc.reshape(TH, 2, Wo, c2)                         # split major dim only (cheap)
    even = xc[:, 0]                                        # x rows 2r      (TH, Wo, 2*Cin)
    odd = xc[:, 1]                                         # x rows 2r + 1
    top = xt_ref[0].astype(jnp.float32)                    # (1, Wo, 2*Cin): x row 2*i*TH - 1
    top = jnp.where(i == 0, jnp.zeros_like(top), top)      # zero padding at the image top
    odd_m1 = jnp.concatenate([top, odd[:-1]], axis=0)      # x rows 2r - 1

    def prev_col(a):                                       # column j-1, zero fill at image left
        return jnp.concatenate([jnp.zeros_like(a[:, :1]), a[:, :-1]], axis=1)

    # Single im2col matmul for the stride-2 3x3 conv (K = 12*Cin; zero weight rows kill the
    # 3 unused phase slots).  One MXU push instead of 9 tiny K=Cin dots.
    pat = jnp.concatenate(
        [prev_col(odd_m1), odd_m1, prev_col(even), even, prev_col(odd), odd], axis=-1
    ).reshape(TH * Wo, 6 * c2)
    y = jnp.dot(pat.astype(mm_dtype), w1_ref[...], preferred_element_type=jnp.float32)
    y = y + b1_ref[0]
    y = jnp.where(y >= 0, y, negative_slope * y)           # fused LeakyReLU
    y_ref[0] = y.reshape(TH, Wo, Cout).astype(y_ref.dtype)

    # Skip branch: 1x1 stride-2 conv == matmul on the (even row, even col) phase, which lives in
    # the first Cin lanes of `even`; ws_ref's lower half is zero so no lane slicing is needed.
    s = jnp.dot(even.reshape(TH * Wo, c2), ws_ref[...], preferred_element_type=jnp.float32)
    s = s + bs_ref[0]
    s_ref[0] = s.reshape(TH, Wo, Cout).astype(s_ref.dtype)


def _conv_gdn_add_kernel(yc_ref, yt_ref, yb_ref, s_ref, w2_ref, b2_ref, gt_ref, beta_ref,
                         o_ref, *, mm_dtype):
    # yc_ref: (1, TH, Wo, C)  conv1 output rows [i*TH, (i+1)*TH)
    # yt_ref/yb_ref: (1, 1, Wo, C)  halo rows i*TH-1 / (i+1)*TH (clamped; masked at the borders)
    # s_ref : (1, TH, Wo, C)  skip branch
    # w2_ref: (9*C, C); gt_ref: (C, C) = gamma^T; b2_ref/beta_ref: (1, C)
    TH, Wo, C = o_ref.shape[1], o_ref.shape[2], o_ref.shape[3]
    i = pl.program_id(1)
    last = pl.num_programs(1) - 1

    c = yc_ref[0].astype(jnp.float32)                      # (TH, Wo, C)
    t = yt_ref[0].astype(jnp.float32)                      # (1, Wo, C)
    b = yb_ref[0].astype(jnp.float32)                      # (1, Wo, C)
    t = jnp.where(i == 0, jnp.zeros_like(t), t)            # zero padding at the image top
    b = jnp.where(i == last, jnp.zeros_like(b), b)         # zero padding at the image bottom
    rows = jnp.concatenate([t, c, b], axis=0)              # (TH + 2, Wo, C)
    zc = jnp.zeros((TH + 2, 1, C), jnp.float32)
    xp = jnp.concatenate([zc, rows, zc], axis=1)           # (TH + 2, Wo + 2, C)

    # Single im2col matmul for the stride-1 3x3 conv (K = 9*C).
    pat = jnp.concatenate(
        [xp[dy:dy + TH, dx:dx + Wo] for dy in range(3) for dx in range(3)], axis=-1
    ).reshape(TH * Wo, 9 * C)
    y = jnp.dot(pat.astype(mm_dtype), w2_ref[...], preferred_element_type=jnp.float32)
    y = y + b2_ref[0]

    # GDN (inverse=False):  y / sqrt(beta + gamma @ y^2), then the residual add of the skip branch.
    # TODO(synk): the torch GDN reparameterizes beta/gamma (NonNegativeParametrizer / beta_min);
    # that is a training-time constraint -- here beta/gamma are the materialized non-negative
    # values, so the sqrt argument is positive and no clamp is required.
    norm = jnp.dot(y * y, gt_ref[...], preferred_element_type=jnp.float32) + beta_ref[0]
    out = y * lax.rsqrt(norm) + s_ref[0].astype(jnp.float32).reshape(TH * Wo, C)
    o_ref[0] = out.reshape(TH, Wo, C).astype(o_ref.dtype)


# ----------------------------------------------------------------------------
# Weight preprocessing (tiny host-side ops, done once per call)
# ----------------------------------------------------------------------------
def _stride2_conv_weight(w):
    # PyTorch (Cout, Cin, 3, 3) -> (12*Cin, Cout) matching the phase-packed im2col lane order.
    cout, cin = w.shape[0], w.shape[1]
    wt = jnp.transpose(w, (2, 3, 1, 0))                    # (dy, dx, ci, co)
    z = jnp.zeros((cin, cout), w.dtype)
    rows = []
    for dy in range(3):
        rows += [z, wt[dy, 0], wt[dy, 1], wt[dy, 2]]
    return jnp.concatenate(rows, axis=0)


def _stride1_conv_weight(w):
    # PyTorch (Cout, C, 3, 3) -> (9*C, Cout), taps (dy, dx) row-major to match the im2col concat.
    return jnp.transpose(w, (2, 3, 1, 0)).reshape(9 * w.shape[1], w.shape[0])


def _skip_conv_weight(w):
    # PyTorch (Cout, Cin, 1, 1) -> (2*Cin, Cout); odd-column-phase half is zero.
    cout, cin = w.shape[0], w.shape[1]
    return jnp.concatenate([w[:, :, 0, 0].T, jnp.zeros((cin, cout), w.dtype)], axis=0)


# ----------------------------------------------------------------------------
# Tiling helpers / pallas_call wrappers
# ----------------------------------------------------------------------------
def _largest_divisor_leq(n, cap):
    cap = max(1, min(n, cap))
    for t in range(cap, 1, -1):
        if n % t == 0:
            return t
    return n   # no even tiling <= cap; fall back to the whole extent.
               # TODO(synk): support ragged (masked) last row tiles.


def _row_tile(n_rows, bytes_per_row, max_row_tile):
    budget_rows = max(1, _TILE_BUDGET_BYTES // max(1, bytes_per_row))
    return _largest_divisor_leq(n_rows, min(max_row_tile, budget_rows))


def _compiler_params():
    return pltpu.CompilerParams(
        dimension_semantics=("parallel", "parallel"),      # batch x row-tiles
        vmem_limit_bytes=_VMEM_LIMIT_BYTES,
    )


def _down_conv_skip(x_r, w1_eff, b1, ws_eff, bs, cout, *, max_row_tile, mm_dtype):
    N, H, Wo, c2 = x_r.shape
    Ho = H // 2
    # rough per-output-row f32 bytes: x rows + im2col + two outputs, double buffered
    bytes_per_row = Wo * (2 * c2 + 6 * c2 + 2 * cout) * 4 * 2
    TH = _row_tile(Ho, bytes_per_row, max_row_tile)

    kernel = functools.partial(_down_conv_skip_kernel, negative_slope=0.01, mm_dtype=mm_dtype)
    return pl.pallas_call(
        kernel,
        out_shape=(jax.ShapeDtypeStruct((N, Ho, Wo, cout), x_r.dtype),
                   jax.ShapeDtypeStruct((N, Ho, Wo, cout), x_r.dtype)),
        grid_spec=pltpu.PrefetchScalarGridSpec(
            num_scalar_prefetch=0,
            grid=(N, Ho // TH),
            in_specs=[
                # centre rows: x rows [2*i*TH, 2*(i+1)*TH)
                pl.BlockSpec((1, 2 * TH, Wo, c2), lambda n, i: (n, i, 0, 0)),
                # top halo row 2*i*TH - 1 (clamped; zeroed in-kernel on the first tile)
                pl.BlockSpec((1, 1, Wo, c2),
                             lambda n, i: (n, jnp.maximum(2 * TH * i - 1, 0), 0, 0)),
                # weights / biases: constant index_map -> resident, no per-step re-DMA
                pl.BlockSpec((6 * c2, cout), lambda n, i: (0, 0)),
                pl.BlockSpec((1, cout), lambda n, i: (0, 0)),
                pl.BlockSpec((c2, cout), lambda n, i: (0, 0)),
                pl.BlockSpec((1, cout), lambda n, i: (0, 0)),
            ],
            out_specs=(pl.BlockSpec((1, TH, Wo, cout), lambda n, i: (n, i, 0, 0)),
                       pl.BlockSpec((1, TH, Wo, cout), lambda n, i: (n, i, 0, 0))),
        ),
        compiler_params=_compiler_params(),
    )(x_r, x_r, w1_eff, b1, ws_eff, bs)


def _conv_gdn_add(y1, skip, w2_eff, b2, gamma_t, beta, *, max_row_tile, mm_dtype):
    N, Ho, Wo, C = y1.shape
    bytes_per_row = Wo * C * (1 + 9 + 9 + 2) * 4 * 2
    TH = _row_tile(Ho, bytes_per_row, max_row_tile)

    kernel = functools.partial(_conv_gdn_add_kernel, mm_dtype=mm_dtype)
    return pl.pallas_call(
        kernel,
        out_shape=jax.ShapeDtypeStruct((N, Ho, Wo, C), y1.dtype),
        grid_spec=pltpu.PrefetchScalarGridSpec(
            num_scalar_prefetch=0,
            grid=(N, Ho // TH),
            in_specs=[
                pl.BlockSpec((1, TH, Wo, C), lambda n, i: (n, i, 0, 0)),
                pl.BlockSpec((1, 1, Wo, C),
                             lambda n, i: (n, jnp.maximum(i * TH - 1, 0), 0, 0)),
                pl.BlockSpec((1, 1, Wo, C),
                             lambda n, i: (n, jnp.minimum((i + 1) * TH, Ho - 1), 0, 0)),
                pl.BlockSpec((1, TH, Wo, C), lambda n, i: (n, i, 0, 0)),
                pl.BlockSpec((9 * C, C), lambda n, i: (0, 0)),
                pl.BlockSpec((1, C), lambda n, i: (0, 0)),
                pl.BlockSpec((C, C), lambda n, i: (0, 0)),
                pl.BlockSpec((1, C), lambda n, i: (0, 0)),
            ],
            out_specs=pl.BlockSpec((1, TH, Wo, C), lambda n, i: (n, i, 0, 0)),
        ),
        compiler_params=_compiler_params(),
    )(y1, y1, y1, skip, w2_eff, b2, gamma_t, beta)


def residual_block_with_stride(x_nchw, params, *, max_row_tile=256, mm_dtype=jnp.float32):
    """Forward pass of ResidualBlockWithStride (stride=2). x: (N, Cin, H, W) NCHW f32."""
    N, Cin, H, W = x_nchw.shape
    if H % 2 or W % 2:
        raise ValueError("stride-2 block expects even spatial dims")
    Cout = params["w1"].shape[0]
    Ho, Wo = H // 2, W // 2

    x = jnp.transpose(x_nchw, (0, 2, 3, 1))                # NCHW -> NHWC (channels on lanes)
    # Free row-major regroup exposing the stride-2 column phases:
    #   x_r[n, h, j, px*Cin + c] == x[n, h, 2*j + px, c]
    x_r = x.reshape(N, H, Wo, 2 * Cin)

    w1_eff = _stride2_conv_weight(params["w1"]).astype(mm_dtype)
    w2_eff = _stride1_conv_weight(params["w2"]).astype(mm_dtype)
    ws_eff = _skip_conv_weight(params["ws"]).astype(jnp.float32)
    b1 = params["b1"].reshape(1, Cout).astype(jnp.float32)
    b2 = params["b2"].reshape(1, Cout).astype(jnp.float32)
    bs = params["bs"].reshape(1, Cout).astype(jnp.float32)
    gamma_t = jnp.transpose(params["gamma"]).astype(jnp.float32)
    beta = params["beta"].reshape(1, Cout).astype(jnp.float32)

    y1, skip = _down_conv_skip(x_r, w1_eff, b1, ws_eff, bs, Cout,
                               max_row_tile=max_row_tile, mm_dtype=mm_dtype)
    out = _conv_gdn_add(y1, skip, w2_eff, b2, gamma_t, beta,
                        max_row_tile=max_row_tile, mm_dtype=mm_dtype)
    return jnp.transpose(out, (0, 3, 1, 2))                # NHWC -> NCHW


# ----------------------------------------------------------------------------
# Pure-JAX reference (for self-check)
# ----------------------------------------------------------------------------
def _ref_forward(x, p):
    dn = ("NCHW", "OIHW", "NCHW")
    y = lax.conv_general_dilated(x, p["w1"], (2, 2), ((1, 1), (1, 1)), dimension_numbers=dn)
    y = y + p["b1"][None, :, None, None]
    y = jnp.where(y >= 0, y, 0.01 * y)                     # LeakyReLU (default slope)
    y = lax.conv_general_dilated(y, p["w2"], (1, 1), ((1, 1), (1, 1)), dimension_numbers=dn)
    y = y + p["b2"][None, :, None, None]
    norm = jnp.einsum("nchw,dc->ndhw", y * y, p["gamma"]) + p["beta"][None, :, None, None]
    y = y * lax.rsqrt(norm)                                # GDN (inverse=False)
    s = lax.conv_general_dilated(x, p["ws"], (2, 2), "VALID", dimension_numbers=dn)
    s = s + p["bs"][None, :, None, None]
    return s + y


# ----------------------------------------------------------------------------
if __name__ == "__main__":
    cin, cout = 4, 8
    N, H, W = 2, 16, 16

    key = jax.random.PRNGKey(0)
    kx, k1, k2, k3, k4, k5, k6, k7 = jax.random.split(key, 8)

    params = {
        "w1": 0.1 * jax.random.normal(k1, (cout, cin, 3, 3), jnp.float32),
        "b1": 0.05 * jax.random.normal(k2, (cout,), jnp.float32),
        "w2": 0.1 * jax.random.normal(k3, (cout, cout, 3, 3), jnp.float32),
        "b2": 0.05 * jax.random.normal(k4, (cout,), jnp.float32),
        "ws": 0.1 * jax.random.normal(k5, (cout, cin, 1, 1), jnp.float32),
        "bs": 0.05 * jax.random.normal(k6, (cout,), jnp.float32),
        # GDN parameters after the non-negative reparameterization: beta > 0, gamma >= 0.
        "gamma": 0.1 * jnp.eye(cout, dtype=jnp.float32)
                 + 0.02 * jnp.abs(jax.random.normal(k7, (cout, cout), jnp.float32)),
        "beta": jnp.ones((cout,), jnp.float32),
    }
    x = jax.random.normal(kx, (N, cin, H, W), jnp.float32)

    # max_row_tile=4 forces multiple row tiles (Ho=8 -> 2 tiles) so the halo path is exercised.
    out = residual_block_with_stride(x, params, max_row_tile=4)
    out = jax.block_until_ready(out)
    assert out.shape == (N, cout, H // 2, W // 2), out.shape

    ref = _ref_forward(x, params)
    np.testing.assert_allclose(np.asarray(out), np.asarray(ref), rtol=2e-4, atol=2e-4)

    print("KERNEL_OK")
</pallas_src>

<mosaic_0001>
module attributes {stable_mosaic.version = 11 : i64} {
  func.func @_down_conv_skip_kernel(%arg0: i32, %arg1: i32, %arg2: memref<1x8x8x8xf32, #tpu.memory_space<vmem>>, %arg3: memref<1x1x8x8xf32, #tpu.memory_space<vmem>>, %arg4: memref<48x8xf32, #tpu.memory_space<vmem>>, %arg5: memref<1x8xf32, #tpu.memory_space<vmem>>, %arg6: memref<8x8xf32, #tpu.memory_space<vmem>>, %arg7: memref<1x8xf32, #tpu.memory_space<vmem>>, %arg8: memref<1x4x8x8xf32, #tpu.memory_space<vmem>>, %arg9: memref<1x4x8x8xf32, #tpu.memory_space<vmem>>) attributes {dimension_semantics = [#tpu.dimension_semantics<parallel>, #tpu.dimension_semantics<parallel>], iteration_bounds = array<i64: 2, 2>, scalar_prefetch = 0 : i64, scratch_operands = 0 : i64, tpu.core_type = #tpu.core_type<tc>, window_params = [{transform_indices = @transform_0, window_bounds = array<i64: 1, 8, 8, 8>}, {transform_indices = @transform_1, window_bounds = array<i64: 1, 1, 8, 8>}, {pipeline_mode = #tpu.pipeline_mode<synchronous>, transform_indices = @transform_2, window_bounds = array<i64: 48, 8>}, {pipeline_mode = #tpu.pipeline_mode<synchronous>, transform_indices = @transform_3, window_bounds = array<i64: 1, 8>}, {pipeline_mode = #tpu.pipeline_mode<synchronous>, transform_indices = @transform_4, window_bounds = array<i64: 8, 8>}, {pipeline_mode = #tpu.pipeline_mode<synchronous>, transform_indices = @transform_5, window_bounds = array<i64: 1, 8>}, {transform_indices = @transform_6, window_bounds = array<i64: 1, 4, 8, 8>}, {transform_indices = @transform_7, window_bounds = array<i64: 1, 4, 8, 8>}]} {
    %c0 = arith.constant 0 : index
    %c0_0 = arith.constant 0 : index
    %c0_1 = arith.constant 0 : index
    %c0_2 = arith.constant 0 : index
    %0 = vector.load %arg2[%c0, %c0_0, %c0_1, %c0_2] : memref<1x8x8x8xf32, #tpu.memory_space<vmem>>, vector<1x8x8x8xf32>
    %1 = vector.shape_cast %0 : vector<1x8x8x8xf32> to vector<8x8x8xf32>
    %2 = vector.shape_cast %1 : vector<8x8x8xf32> to vector<4x2x8x8xf32>
    %3 = vector.extract_strided_slice %2 {offsets = [0, 0, 0, 0], sizes = [4, 1, 8, 8], strides = [1, 1, 1, 1]} : vector<4x2x8x8xf32> to vector<4x1x8x8xf32>
    %4 = vector.shape_cast %3 : vector<4x1x8x8xf32> to vector<4x8x8xf32>
    %5 = vector.extract_strided_slice %2 {offsets = [0, 1, 0, 0], sizes = [4, 1, 8, 8], strides = [1, 1, 1, 1]} : vector<4x2x8x8xf32> to vector<4x1x8x8xf32>
    %6 = vector.shape_cast %5 : vector<4x1x8x8xf32> to vector<4x8x8xf32>
    %c0_3 = arith.constant 0 : index
    %c0_4 = arith.constant 0 : index
    %c0_5 = arith.constant 0 : index
    %c0_6 = arith.constant 0 : index
    %7 = vector.load %arg3[%c0_3, %c0_4, %c0_5, %c0_6] : memref<1x1x8x8xf32, #tpu.memory_space<vmem>>, vector<1x1x8x8xf32>
    %8 = vector.shape_cast %7 : vector<1x1x8x8xf32> to vector<1x8x8xf32>
    %c0_i32 = arith.constant 0 : i32
    %9 = arith.cmpi eq, %arg1, %c0_i32 : i32
    %cst = arith.constant 0.000000e+00 : f32
    %10 = vector.broadcast %cst : f32 to vector<1x8x8xf32>
    %11 = arith.select %9, %10, %8 : vector<1x8x8xf32>
    %12 = vector.extract_strided_slice %6 {offsets = [0, 0, 0], sizes = [3, 8, 8], strides = [1, 1, 1]} : vector<4x8x8xf32> to vector<3x8x8xf32>
    %13 = tpu.concatenate %11, %12 in 0 : vector<1x8x8xf32>, vector<3x8x8xf32> -> vector<4x8x8xf32>
    %cst_7 = arith.constant 0.000000e+00 : f32
    %14 = vector.broadcast %cst_7 : f32 to vector<4x1x8xf32>
    %15 = vector.extract_strided_slice %13 {offsets = [0, 0, 0], sizes = [4, 7, 8], strides = [1, 1, 1]} : vector<4x8x8xf32> to vector<4x7x8xf32>
    %16 = tpu.concatenate %14, %15 in 1 : vector<4x1x8xf32>, vector<4x7x8xf32> -> vector<4x8x8xf32>
    %cst_8 = arith.constant 0.000000e+00 : f32
    %17 = vector.broadcast %cst_8 : f32 to vector<4x1x8xf32>
    %18 = vector.extract_strided_slice %4 {offsets = [0, 0, 0], sizes = [4, 7, 8], strides = [1, 1, 1]} : vector<4x8x8xf32> to vector<4x7x8xf32>
    %19 = tpu.concatenate %17, %18 in 1 : vector<4x1x8xf32>, vector<4x7x8xf32> -> vector<4x8x8xf32>
    %cst_9 = arith.constant 0.000000e+00 : f32
    %20 = vector.broadcast %cst_9 : f32 to vector<4x1x8xf32>
    %21 = vector.extract_strided_slice %6 {offsets = [0, 0, 0], sizes = [4, 7, 8], strides = [1, 1, 1]} : vector<4x8x8xf32> to vector<4x7x8xf32>
    %22 = tpu.concatenate %20, %21 in 1 : vector<4x1x8xf32>, vector<4x7x8xf32> -> vector<4x8x8xf32>
    %23 = tpu.concatenate %16, %13, %19, %4, %22, %6 in 2 : vector<4x8x8xf32>, vector<4x8x8xf32>, vector<4x8x8xf32>, vector<4x8x8xf32>, vector<4x8x8xf32>, vector<4x8x8xf32> -> vector<4x8x48xf32>
    %24 = vector.shape_cast %23 : vector<4x8x48xf32> to vector<32x48xf32>
    %c0_10 = arith.constant 0 : index
    %c0_11 = arith.constant 0 : index
    %25 = vector.load %arg4[%c0_10, %c0_11] : memref<48x8xf32, #tpu.memory_space<vmem>>, vector<48x8xf32>
    %cst_12 = arith.constant dense<0.000000e+00> : vector<32x8xf32>
    %26 = tpu.matmul %24, %25, %cst_12 {dimension_numbers = #tpu.dot_dimension_numbers<[1], [0], [0], [1], [0, 0, 1, 1], [], []>} : vector<32x48xf32>, vector<48x8xf32>, vector<32x8xf32> -> vector<32x8xf32>
    %c0_13 = arith.constant 0 : index
    %c0_14 = arith.constant 0 : index
    %27 = vector.load %arg5[%c0_13, %c0_14] : memref<1x8xf32, #tpu.memory_space<vmem>>, vector<1x8xf32>
    %28 = vector.shape_cast %27 : vector<1x8xf32> to vector<8xf32>
    %29 = vector.shape_cast %28 : vector<8xf32> to vector<1x8xf32>
    %30 = vector.broadcast %29 : vector<1x8xf32> to vector<32x8xf32>
    %31 = arith.addf %26, %30 : vector<32x8xf32>
    %cst_15 = arith.constant 0.000000e+00 : f32
    %32 = vector.broadcast %cst_15 : f32 to vector<32x8xf32>
    %33 = arith.cmpf oge, %31, %32 : vector<32x8xf32>
    %cst_16 = arith.constant 0.00999999977 : f32
    %34 = vector.broadcast %cst_16 : f32 to vector<32x8xf32>
    %35 = arith.mulf %34, %31 : vector<32x8xf32>
    %36 = arith.select %33, %31, %35 : vector<32x8xi1>, vector<32x8xf32>
    %37 = vector.shape_cast %36 : vector<32x8xf32> to vector<4x8x8xf32>
    %c0_17 = arith.constant 0 : index
    %c0_18 = arith.constant 0 : index
    %c0_19 = arith.constant 0 : index
    %c0_20 = arith.constant 0 : index
    %38 = vector.load %arg8[%c0_17, %c0_18, %c0_19, %c0_20] : memref<1x4x8x8xf32, #tpu.memory_space<vmem>>, vector<1x4x8x8xf32>
    %39 = vector.shape_cast %38 : vector<1x4x8x8xf32> to vector<4x8x8xf32>
    %40 = vector.shape_cast %37 : vector<4x8x8xf32> to vector<1x4x8x8xf32>
    tpu.vector_store %arg8[%c0_17, %c0_18, %c0_19, %c0_20], %40 {strides = array<i32>} : memref<1x4x8x8xf32, #tpu.memory_space<vmem>>, vector<1x4x8x8xf32>,
    %41 = vector.shape_cast %4 : vector<4x8x8xf32> to vector<32x8xf32>
    %c0_21 = arith.constant 0 : index
    %c0_22 = arith.constant 0 : index
    %42 = vector.load %arg6[%c0_21, %c0_22] : memref<8x8xf32, #tpu.memory_space<vmem>>, vector<8x8xf32>
    %cst_23 = arith.constant dense<0.000000e+00> : vector<32x8xf32>
    %43 = tpu.matmul %41, %42, %cst_23 {dimension_numbers = #tpu.dot_dimension_numbers<[1], [0], [0], [1], [0, 0, 1, 1], [], []>} : vector<32x8xf32>, vector<8x8xf32>, vector<32x8xf32> -> vector<32x8xf32>
    %c0_24 = arith.constant 0 : index
    %c0_25 = arith.constant 0 : index
    %44 = vector.load %arg7[%c0_24, %c0_25] : memref<1x8xf32, #tpu.memory_space<vmem>>, vector<1x8xf32>
    %45 = vector.shape_cast %44 : vector<1x8xf32> to vector<8xf32>
    %46 = vector.shape_cast %45 : vector<8xf32> to vector<1x8xf32>
    %47 = vector.broadcast %46 : vector<1x8xf32> to vector<32x8xf32>
    %48 = arith.addf %43, %47 : vector<32x8xf32>
    %49 = vector.shape_cast %48 : vector<32x8xf32> to vector<4x8x8xf32>
    %c0_26 = arith.constant 0 : index
    %c0_27 = arith.constant 0 : index
    %c0_28 = arith.constant 0 : index
    %c0_29 = arith.constant 0 : index
    %50 = vector.load %arg9[%c0_26, %c0_27, %c0_28, %c0_29] : memref<1x4x8x8xf32, #tpu.memory_space<vmem>>, vector<1x4x8x8xf32>
    %51 = vector.shape_cast %50 : vector<1x4x8x8xf32> to vector<4x8x8xf32>
    %52 = vector.shape_cast %49 : vector<4x8x8xf32> to vector<1x4x8x8xf32>
    tpu.vector_store %arg9[%c0_26, %c0_27, %c0_28, %c0_29], %52 {strides = array<i32>} : memref<1x4x8x8xf32, #tpu.memory_space<vmem>>, vector<1x4x8x8xf32>,
    return
  }
  func.func @transform_0(%arg0: i32, %arg1: i32) -> (i32, i32, i32, i32) {
    %c0_i32 = arith.constant 0 : i32
    %c0_i32_0 = arith.constant 0 : i32
    %c0_i32_1 = arith.constant 0 : i32
    return %arg0, %arg1, %c0_i32, %c0_i32_0 : i32, i32, i32, i32
  }
  func.func @transform_1(%arg0: i32, %arg1: i32) -> (i32, i32, i32, i32) {
    %c8_i32 = arith.constant 8 : i32
    %0 = arith.muli %c8_i32, %arg1 : i32
    %c1_i32 = arith.constant 1 : i32
    %1 = arith.subi %0, %c1_i32 : i32
    %c0_i32 = arith.constant 0 : i32
    %2 = arith.maxsi %1, %c0_i32 : i32
    %c0_i32_0 = arith.constant 0 : i32
    %c0_i32_1 = arith.constant 0 : i32
    %c0_i32_2 = arith.constant 0 : i32
    return %arg0, %2, %c0_i32_0, %c0_i32_1 : i32, i32, i32, i32
  }
  func.func @transform_2(%arg0: i32, %arg1: i32) -> (i32, i32) {
    %c0_i32 = arith.constant 0 : i32
    %c0_i32_0 = arith.constant 0 : i32
    %c0_i32_1 = arith.constant 0 : i32
    return %c0_i32, %c0_i32_0 : i32, i32
  }
  func.func @transform_3(%arg0: i32, %arg1: i32) -> (i32, i32) {
    %c0_i32 = arith.constant 0 : i32
    %c0_i32_0 = arith.constant 0 : i32
    %c0_i32_1 = arith.constant 0 : i32
    return %c0_i32, %c0_i32_0 : i32, i32
  }
  func.func @transform_4(%arg0: i32, %arg1: i32) -> (i32, i32) {
    %c0_i32 = arith.constant 0 : i32
    %c0_i32_0 = arith.constant 0 : i32
    %c0_i32_1 = arith.constant 0 : i32
    return %c0_i32, %c0_i32_0 : i32, i32
  }
  func.func @transform_5(%arg0: i32, %arg1: i32) -> (i32, i32) {
    %c0_i32 = arith.constant 0 : i32
    %c0_i32_0 = arith.constant 0 : i32
    %c0_i32_1 = arith.constant 0 : i32
    return %c0_i32, %c0_i32_0 : i32, i32
  }
  func.func @transform_6(%arg0: i32, %arg1: i32) -> (i32, i32, i32, i32) {
    %c0_i32 = arith.constant 0 : i32
    %c0_i32_0 = arith.constant 0 : i32
    %c0_i32_1 = arith.constant 0 : i32
    return %arg0, %arg1, %c0_i32, %c0_i32_0 : i32, i32, i32, i32
  }
  func.func @transform_7(%arg0: i32, %arg1: i32) -> (i32, i32, i32, i32) {
    %c0_i32 = arith.constant 0 : i32
    %c0_i32_0 = arith.constant 0 : i32
    %c0_i32_1 = arith.constant 0 : i32
    return %arg0, %arg1, %c0_i32, %c0_i32_0 : i32, i32, i32, i32
  }
}

</mosaic_0001>

<bundles_post_ra>
// kernel: tpu_custom_call.1
= control target key start
LH: loop header
LB: loop body
LE: loop exit
PB: predicated region body
PF: predicated region fallthrough
CT: control target
= control target key end

     0   :  { %s1590_s0 = inlined_call_operand.vmem [shape: f32[2,16,8,8], index: 0, kind: input, shape index: {}]   ;;  %s1591_s1 = inlined_call_operand.vmem [shape: f32[2,16,8,8], index: 1, kind: input, shape index: {}]   ;;  %s1592_s2 = inlined_call_operand.vmem [shape: f32[48,8], index: 2, kind: input, shape index: {}]   ;;  %s1593_s3 = inlined_call_operand.vmem [shape: f32[1,8], index: 3, kind: input, shape index: {}]   ;;  %s1594_s4 = inlined_call_operand.vmem [shape: f32[8,8], index: 4, kind: input, shape index: {}]   ;;  %s1595_s5 = inlined_call_operand.vmem [shape: f32[1,8], index: 5, kind: input, shape index: {}]   ;;  %s1596_s6 = inlined_call_operand.hbm [shape: f32[2,8,8,8], index: 6, kind: output, shape index: {0}]   ;;  %s1597_s7 = inlined_call_operand.hbm [shape: f32[2,8,8,8], index: 7, kind: output, shape index: {1}]  }
   0x1   :  { %1605 = sst [smem:[#allocation9_spill]] %s1590_s0 }
   0x2   :  { %13 = vsyncpa [#allocation3], 0 }
   0x3   :  { %15 = vsyncpa [#allocation3 + $0x1], 0 }
   0x4   :  { %16 = vsyncpa [#allocation5], 0 }
   0x5   :  { %18 = vsyncpa [#allocation5 + $0x1], 0  ;;  %s1274_s24 = smov 0   ;;  %s1276_s25 = smov 0  }
   0x6   :  { %s1278_s26 = smov 0   ;;  %s1280_s27 = smov 0  }
   0x7   :  { %s1282_s28 = smov 0   ;;  %s1284_s29 = smov 0  }
   0x8   :  { %s1286_s30 = smov 0   ;;  %s1288_s8 = smov 0  }
   0x9 LB: > { %s931_s9 = sadd.s32 4294967295, %s1224_s8   ;;  %s932_s10 = sadd.s32 4294967294, %s1224_s8   ;;  %s1224_s8 = sphi %s1288_s8, %s24_s8   ;;  %s1220_s30 = sphi %s1286_s30, %s1622_s30   ;;  %s1216_s29 = sphi %s1284_s29, %s1621_s29   ;;  %s1212_s28 = sphi %s1282_s28, %s1620_s28   ;;  %s1208_s27 = sphi %s1280_s27, %s1619_s27   ;;  %s1204_s26 = sphi %s1278_s26, %s1618_s26   ;;  %s1200_s25 = sphi %s1276_s25, %s1617_s25   ;;  %s1196_s24 = sphi %s1274_s24, %s1616_s24  }
   0xa   : > { %s33_s11 = sadd.s32 1, %s1216_s29  ;;  %s36_s12 = sadd.s32 1, %s1220_s30 }
   0xb   : > { %p34_p0 = scmp.ge.s32.totalorder %s33_s11, 2  ;;  %p203_p1 = scmp.ne.s32.totalorder %s1204_s26, %s1200_s25 }
   0xc   : > { %p204_p2 = scmp.eq.s32.totalorder %s931_s9, 3  ;;  %p209_p5 = scmp.ne.s32.totalorder %s1200_s25, %s1196_s24 }
   0xd   : > { %s1624_s11 = smov (%p34_p0, %s33_s11), 0  ;;  %s1626_s12 = smov (!%p34_p0, %s36_s12), %s1220_s30 }
   0xe   : > { %s189_s13 = ssub.s32 %s1216_s29, %s1624_s11  ;;  %p1325_p3 = por %p204_p2, %p203_p1 }
   0xf   : > { %p38_p4 = scmp.ge.s32.totalorder %s1626_s12, 2  ;;  %p210_p6 = scmp.eq.s32.totalorder %s932_s10, 3 }
  0x10   : > { %p939_p7 = scmp.ge.s32.totalorder %s1224_s8, 1  ;;  %p300_p9 = scmp.lt.s32.totalorder %s1224_s8, 5 }
  0x11   : > { %s1628_s12 = smov (%p38_p4, %s1626_s12), 0  ;;  %p1334_p8 = por %p210_p6, %p209_p5 }
  0x12   : > { %1607 = sst [smem:[#allocation8_spill]] %s1628_s12  ;;  %s188_s16 = ssub.s32 %s1220_s30, %s1628_s12 }
  0x13   : > { %s193_s17 = sadd.s32 1, %s1204_s26  ;;  %s190_s18 = sor.u32 %s189_s13, %s188_s16 }
  0x14   : > { %p301_p10 = pnand %p939_p7, %p300_p9  ;;  %p191_p11 = scmp.eq.s32.totalorder %s190_s18, 0 }
  0x15   : > { %s942_s20 = sshll.u32 (!%p301_p10), %s1208_s27, 3  ;;  %p354_p12 = scmp.lt.s32.totalorder (!%p301_p10), %s1212_s28, 1 }
  0x16   : > { %s1343_s19 = scalar_select %p191_p11, %s1204_s26, %s193_s17  }
  0x17   : > { %304 = sbr.rel (%p301_p10) target bundleno = 401 (0x191), region = 44  ;;  %p356_p13 = scmp.lt.s32.totalorder (!%p301_p10), %s942_s20, 15 }
  0x18   : > { %s1609_s0 = sld [smem:[#allocation9_spill]] (!%p301_p10)  ;;  %s946_s18 = sadd.s32 (!%p301_p10), 4294967295, %s942_s20 }
  0x19   : > { %p365_p0 = scmp.gt.s32.totalorder (!%p301_p10), %s946_s18, 0  ;;  %p947_p1 = scmp.lt.s32.totalorder (!%p301_p10), %s946_s18, 15 }
  0x1a   : > { %s1599_s12 = smov (!%p301_p10), 24   ;;  %p390_p2 = scmp.eq.s32.totalorder (!%p301_p10), %s1208_s27, 0 }
  0x1b   : > { %s1230_s16 = smov (!%p301_p10), 40   ;;  %s966_s13 = sshll.u32 (!%p301_p10), %s1208_s27, 2 }
  0x1c   : > { %s1348_s21 = scalar_select %p354_p12, %s1212_s28, 1  ;;  %vm500_vm0 = vcmask 64512   ;;  %vm407_vm1 = vcmask 1040384   ;;  %v530_v6 = vld [vmem:[%s1592_s2 + $0x28] sm:$0xff]  ;;  %v529_v7 = vld [vmem:[%s1592_s2 + $0x20] sm:$0xff]  ;;  %v528_v11 = vld [vmem:[%s1592_s2 + $0x18] sm:$0xff] }
  0x1d   : > { %s357_s22 = scalar_select %p356_p13, %s942_s20, 15  ;;  %991 = vmatprep.subr.mxu0 %v530_v6  ;;  %v527_v16 = vld [vmem:[%s1592_s2 + $0x10] sm:$0xff]  ;;  %v526_v18 = vld [vmem:[%s1592_s2 + $0x8] sm:$0xff]  ;;  %v525_v23 = vld [vmem:[%s1592_s2] sm:$0xff]  ;;  %vm505_vm2 = vcmask 130048   ;;  %vm510_vm3 = vcmask 195584  }
  0x1e   : > { %s943_s23 = sshll.u32 %s1348_s21, 4  ;;  %992 = vmatpush3.msra.mxu0 %v530_v6  ;;  %s1229_s21 = smov 16   ;;  %v652_v27 = vld [vmem:[%s1594_s4] sm:$0xff]  ;;  %vm515_vm4 = vcmask 261120   ;;  %vm520_vm5 = vcmask 326656   ;;  %vm538_vm6 = vcmask 392192  }
  0x1f   : > { %s359_s9 = sadd.s32 %s943_s23, %s357_s22  ;;  %s1601_s22 = smov 8   ;;  %993 = vmatprep.subr.mxu0 %v529_v7  ;;  %1009 = vmatprep.subr.mxu1 %v652_v27 }
  0x20   : > { %s944_s10 = sshll.u32 %s359_s9, 3  ;;  %994 = vmatpush3.msra.mxu0 %v529_v7  ;;  %1010 = vmatpush3.msra.mxu1 %v652_v27 }
  0x21   : > { %s1356_s17 = scalar_lea.vmem %s1609_s0, %s944_s10  ;;  %s1228_s0 = smov 32   ;;  %995 = vmatprep.subr.mxu0 %v528_v11 }
  0x22   : > { %v1359_v0 = vld [vmem:[%s1356_s17 + $0x10] sm:$0xff]  ;;  %v382_v1 = vld [vmem:[%s1356_s17 + $0x8] sm:$0xff]  ;;  %v381_v2 = vld [vmem:[%s1356_s17] sm:$0xff]  ;;  %s366_s20 = scalar_select %p365_p0, %s946_s18, 0  ;;  %996 = vmatpush3.msra.mxu0 %v528_v11 }
  0x23   : > { %462 = vrot.lane.b32.xlu1 %v1359_v0, %s1599_s12  ;;  %434 = vrot.lane.b32.xlu0 %v382_v1, %s1601_s22  ;;  %v1368_v3 = vld [vmem:[%s1356_s17 + $0x18] sm:$0xff]  ;;  %v400_v4 = vrot.slane %v382_v1, 7  ;;  %v416_v5 = vrot.slane %v381_v2, 7  ;;  %v417_v10 = vrot.slane %v1359_v0, 7  ;;  %v385_v15 = vld [vmem:[%s1356_s17 + $0x20] sm:$0xff] }
  0x24   : > { %1011 = vmatprep.mubr.msk.f32.mxu1 %vm500_vm0, %v381_v2  ;;  %s1630_s20 = smov (!%p947_p1, %s366_s20), 15  ;;  %v401_v13 = vrot.slane %v1368_v3, 7  ;;  %v418_v20 = vrot.slane %v385_v15, 7  ;;  %997 = vmatprep.subr.mxu0 %v527_v16  ;;  %v387_v22 = vld [vmem:[%s1356_s17 + $0x30] sm:$0xff]  ;;  %v386_v24 = vld [vmem:[%s1356_s17 + $0x28] sm:$0xff]  ;;  %v388_v29 = vld [vmem:[%s1356_s17 + $0x38] sm:$0xff] }
  0x25   : > { %v1382_v8 = vsel %vm407_vm1, 0.0, %v400_v4  ;;  %v424_v9 = vsel %vm407_vm1, 0.0, %v416_v5  ;;  %s372_s18 = sadd.s32 %s1630_s20, %s943_s23  ;;  %v425_v12 = vsel %vm407_vm1, 0.0, %v417_v10  ;;  %998 = vmatpush3.msra.mxu0 %v527_v16  ;;  %v419_v26 = vrot.slane %v387_v22, 7  ;;  %1012 = vmatmul.mubr.msk.f32.vlgmr.msra.gmra.mxu1 %vm500_vm0, %v1359_v0  ;;  %s1611_s20 = smov 24  }
  0x26   : > { %s953_s9 = sshll.u32 %s372_s18, 3  ;;  %s1610_s18 = smov 8   ;;  %v1411_v19 = vsel %vm407_vm1, 0.0, %v401_v13  ;;  %999 = vmatprep.subr.mxu0 %v526_v18  ;;  %v426_v25 = vsel %vm407_vm1, 0.0, %v418_v20  ;;  %v402_v30 = vrot.slane %v386_v24, 7  ;;  %v429_v31 = vrot.slane %v388_v29, 7  ;;  %1014 = vmatprep.mubr.msk.f32.mxu1 %vm500_vm0, %v385_v15 }
  0x27   : > { %436 = vrot.lane.b32.xlu1 %v1368_v3, %s1601_s22  ;;  %460 = vrot.lane.b32.xlu0 %v381_v2, %s1599_s12  ;;  %s374_s22 = scalar_lea.vmem %s1591_s1, %s953_s9  ;;  %v427_v28 = vsel %vm407_vm1, 0.0, %v419_v26  ;;  %v959_v10 = vld [vmem:[%s1595_s5] ss:$0 sm:$0xff] }
  0x28   : > { %s1100_s23 = scalar_select %p390_p2, 0, 255  ;;  %1000 = vmatpush3.msra.mxu0 %v526_v18  ;;  %v411_v32 = vsel %vm407_vm1, 0.0, %v402_v30  ;;  %v431_v33 = vsel %vm407_vm1, 0.0, %v429_v31 }
  0x29   : > { %1001 = vmatprep.subr.mxu0 %v525_v23  ;;  %1015 = vmatmul.mubr.msk.f32.gmra.mxu1 %vm500_vm0, %v387_v22 }
  0x2a   : > { %v1101_v14 = vld [vmem:[%s374_s22] sm:%s1100_s23]  ;;  %1002 = vmatpush3.msra.mxu0 %v525_v23 }
  0x2b   : > { %476 = vrot.lane.b32.xlu0 %v1382_v8, %s1228_s0  ;;  %448 = vrot.lane.b32.xlu1 %v424_v9, %s1229_s21  ;;  %v399_v17 = vrot.slane %v1101_v14, 7 }
  0x2d   : > { %v408_v21 = vsel %vm407_vm1, 0.0, %v399_v17 }
  0x2f   : > { %432 = vrot.lane.b32.xlu0 %v1101_v14, %s1610_s18  ;;  %450 = vrot.lane.b32.xlu1 %v425_v12, %s1229_s21 }
  0x33   : > { %478 = vrot.lane.b32.xlu0 %v1411_v19, %s1228_s0  ;;  %488 = vrot.lane.b32.xlu1 %v382_v1, %s1230_s16 }
  0x37   : > { %438 = vrot.lane.b32.xlu0 %v386_v24, %s1610_s18  ;;  %452 = vrot.lane.b32.xlu1 %v426_v25, %s1229_s21 }
  0x3b   : > { %490 = vrot.lane.b32.xlu0 %v1368_v3, %s1230_s16  ;;  %454 = vrot.lane.b32.xlu1 %v427_v28, %s1229_s21 }
  0x3f   : > { %464 = vrot.lane.b32.xlu0 %v385_v15, %s1611_s20  ;;  %466 = vrot.lane.b32.xlu1 %v387_v22, %s1611_s20 }
  0x43   : > { %480 = vrot.lane.b32.xlu0 %v411_v32, %s1228_s0  ;;  %482 = vrot.lane.b32.xlu1 %v431_v33, %s1228_s0  ;;  %s1468_s0 = sand.u32 1, %s1200_s25  }
  0x44   : > { %s1603_s9 = sshll.u32 %s1468_s0, 5 }
  0x45   : > { %s352_s10 = scalar_lea.vmem [#allocation4], %s1603_s9 }
  0x46   : > { %s796_s22 = sshll.u32 %s352_s10, 4  ;;  %s1483_s22 = int_to_ptr.vmem [resolvable:$true] %s796_s22 }
  0x47   : > { %492 = vrot.lane.b32.xlu0 %v386_v24, %s1230_s16  ;;  %494 = vrot.lane.b32.xlu1 %v388_v29, %s1230_s16  ;;  %s967_s16 = sshll.u32 %s1212_s28, 3  ;;  %s1102_s21 = scalar_lea.vmem %s1483_s22, 512 }
  0x48   : > { %s1481_s23 = sadd.s32 %s967_s16, %s966_s13  ;;  %p1103_p4 = scmp.ne.s32.totalorder %s1483_s22, %s1102_s21 }
  0x49   : > { %s1604_s12 = sshll.u32 %s1481_s23, 7  ;;  %s1231_s13 = smov [#allocation4]  }
  0x4a   : > { %s1492_s27 = scalar_lea.hbm %s1597_s7, %s1604_s12  ;;  %p1104_p5 = pnand %p1103_p4, %p1325_p3 }
  0x4b   : > { %s1106_s16 = sshll.u32 %s1231_s13, 4  ;;  %s1107_s16 = int_to_ptr.vmem [resolvable:$false] %s1106_s16 }
  0x4c   : > { %p1105_p6 = pneg %p1104_p5  ;;  %s1108_s9 = scalar_lea.vmem %s1107_s16, 1024 }
  0x4d   : > { %p1109_p7 = scmp.lt.s32.totalorder %s1483_s22, %s1107_s16  ;;  %p1110_p9 = scmp.lt.s32.totalorder %s1108_s9, %s1102_s21 }
  0x4f   : > { %p1111_p10 = por %p1110_p9, %p1109_p7 }
  0x51   : > { %p1112_p11 = pnand %p1111_p10, %p1105_p6 }
  0x95   : > { %v463_v34 = vpop.permute.xlu1 %462  ;;  %v435_v35 = vpop.permute.xlu0 %434 }
  0x96   : > { %v502_v49 = vsel %vm500_vm0, %v1382_v8, %v435_v35 }
  0x99   : > { %v437_v36 = vpop.permute.xlu1 %436  ;;  %v461_v37 = vpop.permute.xlu0 %460 }
  0x9a   : > { %v503_v62 = vsel %vm500_vm0, %v1411_v19, %v437_v36 }
  0x9d   : > { %v477_v38 = vpop.permute.xlu0 %476  ;;  %v449_v39 = vpop.permute.xlu1 %448 }
  0xa1   : > { %v433_v40 = vpop.permute.xlu0 %432  ;;  %v451_v41 = vpop.permute.xlu1 %450 }
  0xa2   : > { %v501_v42 = vsel %vm500_vm0, %v408_v21, %v433_v40  ;;  %v507_v50 = vsel %vm505_vm2, %v502_v49, %v451_v41 }
  0xa3   : > { %v506_v43 = vsel %vm505_vm2, %v501_v42, %v449_v39  ;;  %v512_v53 = vsel %vm510_vm3, %v507_v50, %v463_v34 }
  0xa4   : > { %v511_v44 = vsel %vm510_vm3, %v506_v43, %v461_v37 }
  0xa5   : > { %v479_v45 = vpop.permute.xlu0 %478  ;;  %v489_v46 = vpop.permute.xlu1 %488  ;;  %v516_v47 = vsel %vm515_vm4, %v511_v44, %v477_v38 }
  0xa6   : > { %v521_v48 = vsel %vm520_vm5, %v516_v47, %v489_v46  ;;  %v517_v54 = vsel %vm515_vm4, %v512_v53, %v479_v45 }
  0xa7   : > { %1003 = vmatprep.mubr.msk.f32.mxu0 %vm538_vm6, %v521_v48 }
  0xa9   : > { %v439_v51 = vpop.permute.xlu0 %438  ;;  %v453_v52 = vpop.permute.xlu1 %452 }
  0xaa   : > { %v504_v63 = vsel %vm500_vm0, %v411_v32, %v439_v51  ;;  %v508_v0 = vsel %vm505_vm2, %v503_v62, %v453_v52 }
  0xad   : > { %v491_v55 = vpop.permute.xlu0 %490  ;;  %v455_v56 = vpop.permute.xlu1 %454 }
  0xae   : > { %v522_v57 = vsel %vm520_vm5, %v517_v54, %v491_v55  ;;  %v509_v1 = vsel %vm505_vm2, %v504_v63, %v455_v56 }
  0xaf   : > { %1004 = vmatmul.mubr.msk.f32.vlgmr.msra.gmra.mxu0 %vm538_vm6, %v522_v57 }
  0xb1   : > { %v465_v58 = vpop.permute.xlu0 %464  ;;  %v467_v59 = vpop.permute.xlu1 %466 }
  0xb2   : > { %v513_v2 = vsel %vm510_vm3, %v508_v0, %v465_v58  ;;  %v514_v3 = vsel %vm510_vm3, %v509_v1, %v467_v59 }
  0xb5   : > { %v481_v60 = vpop.permute.xlu0 %480  ;;  %v483_v61 = vpop.permute.xlu1 %482 }
  0xb6   : > { %v518_v4 = vsel %vm515_vm4, %v513_v2, %v481_v60  ;;  %v519_v5 = vsel %vm515_vm4, %v514_v3, %v483_v61 }
  0xb9   : > { %v493_v6 = vpop.permute.xlu0 %492  ;;  %v495_v7 = vpop.permute.xlu1 %494 }
  0xba   : > { %v523_v8 = vsel %vm520_vm5, %v518_v4, %v493_v6  ;;  %v524_v9 = vsel %vm520_vm5, %v519_v5, %v495_v7 }
  0xbb   : > { %1006 = vmatprep.mubr.msk.f32.mxu0 %vm538_vm6, %v523_v8 }
  0xbc   : > { %1007 = vmatmul.mubr.msk.f32.gmra.mxu0 %vm538_vm6, %v524_v9 }
  0xe5   : > { %v1013_v11 = vpop.f32.mrf.mxu1 }
  0xe6   : > { %v740_v12 = vadd.f32 %v1013_v11, %v959_v10 }
  0xe7   : > { %v734_v13 = vpop.f32.mrf.mxu1 }
  0xe8   : > { %754 = vst.msk [vmem:[%s352_s10 + $0x8] sm:$0xff] %vm500_vm0, %v740_v12  ;;  %v735_v14 = vadd.f32 %v959_v10, %v734_v13 }
  0xe9   : > { %v1016_v15 = vpop.f32.mrf.mxu1 }
  0xea   : > { %753 = vst.msk [vmem:[%s352_s10] sm:$0xff] %vm500_vm0, %v735_v14  ;;  %v750_v16 = vadd.f32 %v1016_v15, %v959_v10 }
  0xeb   : > { %v744_v17 = vpop.f32.mrf.mxu1 }
  0xec   : > { %v745_v18 = vadd.f32 %v959_v10, %v744_v17  ;;  %756 = vst.msk [vmem:[%s352_s10 + $0x18] sm:$0xff] %vm500_vm0, %v750_v16 }
  0xee   : > { %755 = vst.msk [vmem:[%s352_s10 + $0x10] sm:$0xff] %vm500_vm0, %v745_v18 }
  0xef   : > { %1115 = shalt.err (!%p1112_p11)
}
  0xf0   : > { %s1116_s10 = scalar_lea.hbm %s1492_s27, 512  ;;  %s1120_s13 = scalar_lea.hbm %s1597_s7, 2048 }
  0xf1   : > { %p1117_p12 = scmp.ne.s32.totalorder %s1492_s27, %s1116_s10  ;;  %p1121_p1 = scmp.lt.s32.totalorder %s1492_s27, %s1597_s7 }
  0xf2   : > { %p1122_p2 = scmp.lt.s32.totalorder %s1120_s13, %s1116_s10 }
  0xf3   : > { %p1118_p13 = pnand %p1117_p12, %p1325_p3 }
  0xf4   : > { %p1123_p4 = por %p1122_p2, %p1121_p1 }
  0xf5   : > { %p1119_p0 = pneg %p1118_p13 }
  0xf7   : > { %p1124_p5 = pnand %p1123_p4, %p1119_p0 }
  0xf9   : > { %1127 = shalt.err (!%p1124_p5)
}
  0xfa   : > { %s1232_s9 = smov 128   ;;  %s1612_s21 = scalar_lea.sflag [#allocation5], %s1468_s0  ;;  %v954_v19 = vld [vmem:[%s1593_s3] ss:$0 sm:$0xff] }
  0xfb   : > { %1018 = dma.vmem_to_hbm [thread:$0]  (%p1325_p3), %s1483_s22, 512, %s1492_s27, %s1612_s21, %s1232_s9, %s1232_s9, %s1610_s18  }
  0xfc   : > { %s1613_s12 = sshll.u32 %s1468_s0, 5  ;;  %s1614_s27 = sshll.u32 %s1481_s23, 7 }
  0xfd   : > { %s345_s28 = scalar_lea.vmem [#allocation2], %s1613_s12  ;;  %s1533_s13 = scalar_lea.hbm %s1596_s6, %s1614_s27 }
  0xfe   : > { %s778_s22 = sshll.u32 %s345_s28, 4  ;;  %s758_s21 = scalar_lea.sflag [#allocation3], %s1468_s0  ;;  %s1535_s22 = int_to_ptr.vmem [resolvable:$true] %s778_s22 }
  0xff   : > { %s1128_s16 = scalar_lea.vmem %s1535_s22, 512  ;;  %s1233_s23 = smov [#allocation2]  }
 0x100   : > { %p1129_p6 = scmp.ne.s32.totalorder %s1535_s22, %s1128_s16  ;;  %s1132_s20 = sshll.u32 %s1233_s23, 4  ;;  %s1133_s20 = int_to_ptr.vmem [resolvable:$false] %s1132_s20 }
 0x101   : > { %s1134_s12 = scalar_lea.vmem %s1133_s20, 1024  ;;  %p1135_p10 = scmp.lt.s32.totalorder %s1535_s22, %s1133_s20 }
 0x102   : > { %p1130_p7 = pnand %p1129_p6, %p1325_p3  ;;  %p1136_p11 = scmp.lt.s32.totalorder %s1134_s12, %s1128_s16 }
 0x104   : > { %p1131_p9 = pneg %p1130_p7  ;;  %p1137_p12 = por %p1136_p11, %p1135_p10 }
 0x106   : > { %p1138_p13 = pnand %p1137_p12, %p1131_p9 }
 0x16f   : > { %v1005_v20 = vpop.f32.mrf.mxu0 }
 0x170   : > { %v623_v21 = vadd.f32 %v1005_v20, %v954_v19 }
 0x171   : > { %v617_v22 = vpop.f32.mrf.mxu0 }
 0x172   : > { %vm637_vm7 = vcmp.ge.f32.partialorder %v623_v21, 0.0  ;;  %v641_v23 = vmul.f32 0.01, %v623_v21  ;;  %v618_v24 = vadd.f32 %v954_v19, %v617_v22 }
 0x174   : > { %v645_v25 = vsel %vm637_vm7, %v623_v21, %v641_v23  ;;  %vm636_vm8 = vcmp.ge.f32.partialorder %v618_v24, 0.0  ;;  %v640_v26 = vmul.f32 0.01, %v618_v24 }
 0x175   : > { %649 = vst.msk [vmem:[%s345_s28 + $0x8] sm:$0xff] %vm500_vm0, %v645_v25 }
 0x176   : > { %v644_v27 = vsel %vm636_vm8, %v618_v24, %v640_v26 }
 0x177   : > { %648 = vst.msk [vmem:[%s345_s28] sm:$0xff] %vm500_vm0, %v644_v27 }
 0x17c   : > { %v1008_v28 = vpop.f32.mrf.mxu0 }
 0x17d   : > { %v633_v29 = vadd.f32 %v1008_v28, %v954_v19 }
 0x17e   : > { %v627_v30 = vpop.f32.mrf.mxu0 }
 0x17f   : > { %vm639_vm9 = vcmp.ge.f32.partialorder %v633_v29, 0.0  ;;  %v643_v31 = vmul.f32 0.01, %v633_v29  ;;  %v628_v32 = vadd.f32 %v954_v19, %v627_v30 }
 0x181   : > { %v647_v33 = vsel %vm639_vm9, %v633_v29, %v643_v31  ;;  %vm638_vm10 = vcmp.ge.f32.partialorder %v628_v32, 0.0  ;;  %v642_v34 = vmul.f32 0.01, %v628_v32 }
 0x182   : > { %651 = vst.msk [vmem:[%s345_s28 + $0x18] sm:$0xff] %vm500_vm0, %v647_v33 }
 0x183   : > { %v646_v35 = vsel %vm638_vm10, %v628_v32, %v642_v34 }
 0x184   : > { %650 = vst.msk [vmem:[%s345_s28 + $0x10] sm:$0xff] %vm500_vm0, %v646_v35 }
 0x185   : > { %1141 = shalt.err (!%p1138_p13)
}
 0x186   : > { %s1142_s28 = scalar_lea.hbm %s1533_s13, 512  ;;  %s1146_s10 = scalar_lea.hbm %s1596_s6, 2048 }
 0x187   : > { %p1143_p0 = scmp.ne.s32.totalorder %s1533_s13, %s1142_s28  ;;  %p1147_p4 = scmp.lt.s32.totalorder %s1533_s13, %s1596_s6 }
 0x188   : > { %p1148_p5 = scmp.lt.s32.totalorder %s1146_s10, %s1142_s28 }
 0x189   : > { %p1144_p1 = pnand %p1143_p0, %p1325_p3 }
 0x18a   : > { %p1149_p6 = por %p1148_p5, %p1147_p4 }
 0x18b   : > { %p1145_p2 = pneg %p1144_p1 }
 0x18d   : > { %p1150_p7 = pnand %p1149_p6, %p1145_p2 }
 0x18f   : > { %1153 = shalt.err (!%p1150_p7)
}
 0x190   : > { %1017 = dma.vmem_to_hbm [thread:$0]  (%p1325_p3), %s1535_s22, 512, %s1533_s13, %s758_s21, %s1232_s9, %s1232_s9, %s1610_s18  }
 0x191 PF: > { %p1028_p9 = scmp.ge.s32.totalorder %s1224_s8, 2  ;;  %s811_s16 = sand.u32 1, %s1196_s24  }
 0x192   : > { %s812_s20 = scalar_lea.sflag [#allocation3], %s811_s16 }
 0x193   : > { %p1022_p10 = pnand %p1028_p9, %p1334_p8 }
 0x195   : > { %p1023_p11 = pneg %p1022_p10 }
 0x197   : > { %1187 = dma.done.wait (%p1023_p11), %s812_s20, 512  }
 0x198   : > { %1189 = vsyncadd (%p1023_p11), %s812_s20, 4294966784  ;;  %s821_s12 = scalar_lea.sflag [#allocation5], %s811_s16 }
 0x199   : > { %1191 = dma.done.wait (%p1023_p11), %s821_s12, 512  }
 0x19a   : > { %1193 = vsyncadd (%p1023_p11), %s821_s12, 4294966784  ;;  %s24_s8 = sadd.s32 1, %s1224_s8   ;;  %s1615_s14 = sld [smem:[#allocation8_spill]] }
 0x19b   : > { %p21_p12 = scmp.ge.s32.totalorder %s24_s8, 6   ;;  %s1616_s24 = smov %s1200_s25 }
 0x19c   : > { %s1617_s25 = smov %s1204_s26  ;;  %s1618_s26 = smov %s1343_s19 }
 0x19d   : > { %s1619_s27 = smov %s1216_s29  ;;  %s1620_s28 = smov %s1220_s30 }
 0x19e   : > { %s1621_s29 = smov %s1624_s11  ;;  %23 = sbr.rel (!%p21_p12) target bundleno = 9 (0x9), region = 99 }
 0x1a0   : > { %s1622_s30 = smov %s1615_s14 }
 0x1a3   :  { %826 = vsyncpa [#allocation3], 1 }
 0x1a4   :  { %828 = vsyncpa [#allocation3 + $0x1], 1 }
 0x1a5   :  { %829 = vsyncpa [#allocation5], 1 }
 0x1a6   :  { %831 = vsyncpa [#allocation5 + $0x1], 1 }

</bundles_post_ra>
